<compile_context>
chip_gen: v7x
topology: tpu7x:2x2x1
jax: 0.10.0
libtpu: 0.0.40
codegen_flags: <defaults>
</compile_context>

<pallas_src>
import functools

import jax
import jax.numpy as jnp
from jax import lax
from jax.experimental import pallas as pl
from jax.experimental.pallas import tpu as pltpu

_LANES = 128
_SUBLANES = 8


def _pow_gamma(x, gamma: float):
    # Integer gamma (default gamma=2) -> repeated multiply on the VPU.
    # Non-integer gamma falls back to float pow (EUP exp/log).
    if float(gamma).is_integer():
        return lax.integer_pow(x, int(gamma))
    return x ** jnp.float32(gamma)


def _make_focal_loss_kernel(gamma: float, n_valid: int, block_rows: int,
                            inner_steps: int):
    def kernel(pneg_ref, ppos_ref, wpos_ref, out_ref, acc_ref):
        s = pl.program_id(0)
        i = pl.program_id(1)

        @pl.when(i == 0)
        def _():
            acc_ref[...] = jnp.zeros_like(acc_ref)

        one = jnp.float32(1.0)
        p_neg = pneg_ref[...]          # (block_rows, 128)
        p_pos = ppos_ref[...]
        w_pos = wpos_ref[...]          # ids  (0 on padding rows)

        q_neg = one - p_neg            # hoisted; reused in both terms
        q_pos = one - p_pos

        # Validity mask replaces the dropped w_neg stream: flat element index
        # (row-major repack) compared against the static valid count.
        row_base = (s * inner_steps + i) * block_rows
        local_row = lax.broadcasted_iota(jnp.int32, (block_rows, _LANES), 0)
        lane = lax.broadcasted_iota(jnp.int32, (block_rows, _LANES), 1)
        flat = (row_base + local_row) * _LANES + lane
        valid = (flat < n_valid).astype(jnp.float32)
        w_neg = valid - w_pos          # == 1 - ids on valid rows, 0 on padding

        term_pos = (_pow_gamma(q_neg, gamma) * jnp.log(p_neg)
                    + _pow_gamma(p_pos, gamma) * jnp.log(q_pos))
        term_neg = (_pow_gamma(p_neg, gamma) * jnp.log(q_neg)
                    + _pow_gamma(q_pos, gamma) * jnp.log(p_pos))

        contrib = term_pos * w_pos + term_neg * w_neg      # (block_rows, 128)
        # Per-step reduce to a single vreg; accumulator touches 1 vreg/step.
        acc_ref[...] -= jnp.sum(contrib, axis=0, keepdims=True)

        @pl.when(i == pl.num_programs(1) - 1)
        def _():
            out_ref[...] = acc_ref[...]      # lane-dense (1, 128) store

    return kernel


@functools.partial(
    jax.jit,
    static_argnames=("gamma", "size_average", "block_rows", "num_splits"))
def _focal_loss_impl(inputs, targets, *, gamma, size_average, block_rows,
                     num_splits):
    N, C = inputs.shape
    assert C >= 2, "FocalLoss forward reads inputs[:, 0] and inputs[:, 1]"
    f32 = jnp.float32

    p_neg = inputs[:, 0].astype(f32)
    p_pos = inputs[:, 1].astype(f32)
    ids = targets.reshape(-1).astype(f32)

    # ---- lane-dense repack: rows of 128 lanes, padded to the grid unit ----
    num_splits = max(1, int(num_splits))
    rows_raw = pl.cdiv(N, _LANES)
    br = max(_SUBLANES,
             min(int(block_rows),
                 (rows_raw + _SUBLANES - 1) // _SUBLANES * _SUBLANES))
    br = (br + _SUBLANES - 1) // _SUBLANES * _SUBLANES
    unit = br * num_splits
    rows = (rows_raw + unit - 1) // unit * unit
    n_pad = rows * _LANES - N
    inner_steps = rows // unit

    def pack(x, fill):
        return jnp.pad(x, (0, n_pad), constant_values=fill).reshape(rows, _LANES)

    p_neg2 = pack(p_neg, 0.5)            # 0.5 keeps logs finite on pad rows
    p_pos2 = pack(p_pos, 0.5)
    w_pos2 = pack(ids, 0.0)              # padded entries masked in-kernel

    data_spec = pl.BlockSpec((br, _LANES),
                             lambda s, i: (s * inner_steps + i, 0))
    out_spec = pl.BlockSpec((1, _LANES), lambda s, i: (0, s))

    out = pl.pallas_call(
        _make_focal_loss_kernel(float(gamma), int(N), br, inner_steps),
        out_shape=jax.ShapeDtypeStruct((1, num_splits * _LANES), f32),
        grid_spec=pltpu.PrefetchScalarGridSpec(
            num_scalar_prefetch=0,
            grid=(num_splits, inner_steps),
            in_specs=[data_spec, data_spec, data_spec],
            out_specs=out_spec,
            scratch_shapes=[pltpu.VMEM((1, _LANES), f32)],
        ),
        compiler_params=pltpu.CompilerParams(
            # split axis -> TensorCore-parallel on v7x; reduction axis serial
            dimension_semantics=("parallel", "arbitrary"),
        ),
    )(p_neg2, p_pos2, w_pos2)

    total = jnp.sum(out)
    if size_average:
        total = total / f32(N)
    return total


def _default_num_splits():
    # 2 splits only help on v7x (2 TensorCores per chip); on single-TC
    # v5e/v6e the split axis is just a serial loop, so keep it at 1.
    try:
        kind = jax.devices()[0].device_kind.lower()
    except Exception:
        return 1
    return 2 if ("v7" in kind or "7x" in kind) else 1


def focal_loss_pallas(inputs, targets, *, gamma=2.0, size_average=False,
                      block_rows=2048, num_splits=None):
    """inputs: (N, C) probabilities in (0,1); targets: (N,) 0/1 labels (float ok)."""
    if num_splits is None:
        num_splits = _default_num_splits()
    return _focal_loss_impl(inputs, targets, gamma=float(gamma),
                            size_average=bool(size_average),
                            block_rows=int(block_rows),
                            num_splits=max(1, int(num_splits)))


def focal_loss_ref(inputs, targets, *, gamma=2.0, size_average=False):
    """Pure-JAX reference mirroring the PyTorch forward."""
    p_pos = inputs[:, 1].reshape(-1, 1)
    p_neg = inputs[:, 0].reshape(-1, 1)
    ids = targets.reshape(-1, 1).astype(jnp.float32)
    bl = (-((1 - p_neg) ** gamma * jnp.log(p_neg)
            + p_pos ** gamma * jnp.log(1 - p_pos)) * ids
          - (p_neg ** gamma * jnp.log(1 - p_neg)
             + (1 - p_pos) ** gamma * jnp.log(p_pos)) * (1 - ids))
    return bl.mean() if size_average else bl.sum()


if __name__ == "__main__":
    key = jax.random.PRNGKey(0)
    gamma = 2.0
    k1, k2, k3, k4 = jax.random.split(key, 4)

    # --- Test 1: module-scale shapes (batch=8, class_num=4) ---
    N, C = 8, 4
    inputs = jax.random.uniform(k1, (N, C), jnp.float32, minval=0.05, maxval=0.95)
    targets = jax.random.bernoulli(k2, 0.5, (N,)).astype(jnp.float32)

    loss_sum = jax.block_until_ready(
        focal_loss_pallas(inputs, targets, gamma=gamma, size_average=False))
    ref_sum = focal_loss_ref(inputs, targets, gamma=gamma, size_average=False)
    assert jnp.allclose(loss_sum, ref_sum, rtol=1e-5, atol=1e-5), (loss_sum, ref_sum)

    loss_mean = jax.block_until_ready(
        focal_loss_pallas(inputs, targets, gamma=gamma, size_average=True))
    ref_mean = focal_loss_ref(inputs, targets, gamma=gamma, size_average=True)
    assert jnp.allclose(loss_mean, ref_mean, rtol=1e-5, atol=1e-5), (loss_mean, ref_mean)

    # --- Test 2: multi-step grid, both splits, and the in-kernel pad mask ---
    N2 = 3000
    inputs2 = jax.random.uniform(k3, (N2, C), jnp.float32, minval=0.05, maxval=0.95)
    targets2 = jax.random.bernoulli(k4, 0.5, (N2,)).astype(jnp.float32)
    loss2 = jax.block_until_ready(
        focal_loss_pallas(inputs2, targets2, gamma=gamma, size_average=False,
                          block_rows=8, num_splits=2))
    ref2 = focal_loss_ref(inputs2, targets2, gamma=gamma, size_average=False)
    assert jnp.allclose(loss2, ref2, rtol=1e-5, atol=1e-3), (loss2, ref2)

    print("KERNEL_OK")
</pallas_src>

<mosaic_0001>
module attributes {stable_mosaic.version = 11 : i64} {
  func.func @kernel(%arg0: i32, %arg1: i32, %arg2: memref<8x128xf32, #tpu.memory_space<vmem>>, %arg3: memref<8x128xf32, #tpu.memory_space<vmem>>, %arg4: memref<8x128xf32, #tpu.memory_space<vmem>>, %arg5: memref<1x128xf32, #tpu.memory_space<vmem>>, %arg6: memref<1x128xf32, #tpu.memory_space<vmem>>) attributes {dimension_semantics = [#tpu.dimension_semantics<parallel>, #tpu.dimension_semantics<arbitrary>], iteration_bounds = array<i64: 1, 1>, scalar_prefetch = 0 : i64, scratch_operands = 1 : i64, tpu.core_type = #tpu.core_type<tc>, window_params = [{transform_indices = @transform_0, window_bounds = array<i64: 8, 128>}, {transform_indices = @transform_1, window_bounds = array<i64: 8, 128>}, {transform_indices = @transform_2, window_bounds = array<i64: 8, 128>}, {transform_indices = @transform_3, window_bounds = array<i64: 1, 128>}]} {
    %c0_i32 = arith.constant 0 : i32
    %0 = arith.cmpi eq, %arg1, %c0_i32 : i32
    %1 = arith.extui %0 : i1 to i32
    %c0_i32_0 = arith.constant 0 : i32
    %2 = arith.cmpi ne, %1, %c0_i32_0 : i32
    scf.if %2 {
      %cst_15 = arith.constant 0.000000e+00 : f32
      %50 = vector.broadcast %cst_15 : f32 to vector<1x128xf32>
      %c0_16 = arith.constant 0 : index
      %c0_17 = arith.constant 0 : index
      %51 = vector.load %arg6[%c0_16, %c0_17] : memref<1x128xf32, #tpu.memory_space<vmem>>, vector<1x128xf32>
      tpu.vector_store %arg6[%c0_16, %c0_17], %50 {strides = array<i32>} : memref<1x128xf32, #tpu.memory_space<vmem>>, vector<1x128xf32>,
    } else {
    }
    %c0 = arith.constant 0 : index
    %c0_1 = arith.constant 0 : index
    %3 = vector.load %arg2[%c0, %c0_1] : memref<8x128xf32, #tpu.memory_space<vmem>>, vector<8x128xf32>
    %c0_2 = arith.constant 0 : index
    %c0_3 = arith.constant 0 : index
    %4 = vector.load %arg3[%c0_2, %c0_3] : memref<8x128xf32, #tpu.memory_space<vmem>>, vector<8x128xf32>
    %c0_4 = arith.constant 0 : index
    %c0_5 = arith.constant 0 : index
    %5 = vector.load %arg4[%c0_4, %c0_5] : memref<8x128xf32, #tpu.memory_space<vmem>>, vector<8x128xf32>
    %cst = arith.constant 1.000000e+00 : f32
    %6 = vector.broadcast %cst : f32 to vector<8x128xf32>
    %7 = arith.subf %6, %3 : vector<8x128xf32>
    %cst_6 = arith.constant 1.000000e+00 : f32
    %8 = vector.broadcast %cst_6 : f32 to vector<8x128xf32>
    %9 = arith.subf %8, %4 : vector<8x128xf32>
    %c1_i32 = arith.constant 1 : i32
    %10 = arith.muli %arg0, %c1_i32 : i32
    %11 = arith.addi %10, %arg1 : i32
    %c8_i32 = arith.constant 8 : i32
    %12 = arith.muli %11, %c8_i32 : i32
    %13 = tpu.iota {dimensions = array<i32: 0>} : vector<8x128xi32>
    %14 = tpu.iota {dimensions = array<i32: 1>} : vector<8x128xi32>
    %15 = vector.broadcast %12 : i32 to vector<8x128xi32>
    %16 = arith.addi %15, %13 : vector<8x128xi32>
    %c128_i32 = arith.constant 128 : i32
    %17 = vector.broadcast %c128_i32 : i32 to vector<8x128xi32>
    %18 = arith.muli %16, %17 : vector<8x128xi32>
    %19 = arith.addi %18, %14 : vector<8x128xi32>
    %c8_i32_7 = arith.constant 8 : i32
    %20 = vector.broadcast %c8_i32_7 : i32 to vector<8x128xi32>
    %21 = arith.cmpi slt, %19, %20 : vector<8x128xi32>
    %22 = arith.extui %21 : vector<8x128xi1> to vector<8x128xi32>
    %23 = arith.sitofp %22 : vector<8x128xi32> to vector<8x128xf32>
    %24 = arith.subf %23, %5 : vector<8x128xf32>
    %25 = arith.mulf %7, %7 : vector<8x128xf32>
    %26 = math.log %3 : vector<8x128xf32>
    %27 = arith.mulf %25, %26 : vector<8x128xf32>
    %28 = arith.mulf %4, %4 : vector<8x128xf32>
    %29 = math.log %9 : vector<8x128xf32>
    %30 = arith.mulf %28, %29 : vector<8x128xf32>
    %31 = arith.addf %27, %30 : vector<8x128xf32>
    %32 = arith.mulf %3, %3 : vector<8x128xf32>
    %33 = math.log %7 : vector<8x128xf32>
    %34 = arith.mulf %32, %33 : vector<8x128xf32>
    %35 = arith.mulf %9, %9 : vector<8x128xf32>
    %36 = math.log %4 : vector<8x128xf32>
    %37 = arith.mulf %35, %36 : vector<8x128xf32>
    %38 = arith.addf %34, %37 : vector<8x128xf32>
    %39 = arith.mulf %31, %5 : vector<8x128xf32>
    %40 = arith.mulf %38, %24 : vector<8x128xf32>
    %41 = arith.addf %39, %40 : vector<8x128xf32>
    %c0_8 = arith.constant 0 : index
    %c0_9 = arith.constant 0 : index
    %42 = vector.load %arg6[%c0_8, %c0_9] : memref<1x128xf32, #tpu.memory_space<vmem>>, vector<1x128xf32>
    %cst_10 = arith.constant dense<0.000000e+00> : vector<128xf32>
    %43 = vector.multi_reduction <add>, %41, %cst_10 [0] : vector<8x128xf32> to vector<128xf32>
    %44 = vector.shape_cast %43 : vector<128xf32> to vector<1x128xf32>
    %45 = arith.subf %42, %44 : vector<1x128xf32>
    %c0_11 = arith.constant 0 : index
    %c0_12 = arith.constant 0 : index
    %46 = vector.load %arg6[%c0_11, %c0_12] : memref<1x128xf32, #tpu.memory_space<vmem>>, vector<1x128xf32>
    tpu.vector_store %arg6[%c0_11, %c0_12], %45 {strides = array<i32>} : memref<1x128xf32, #tpu.memory_space<vmem>>, vector<1x128xf32>,
    %c0_i32_13 = arith.constant 0 : i32
    %47 = arith.cmpi eq, %arg1, %c0_i32_13 : i32
    %48 = arith.extui %47 : i1 to i32
    %c0_i32_14 = arith.constant 0 : i32
    %49 = arith.cmpi ne, %48, %c0_i32_14 : i32
    scf.if %49 {
      %c0_15 = arith.constant 0 : index
      %c0_16 = arith.constant 0 : index
      %50 = vector.load %arg6[%c0_15, %c0_16] : memref<1x128xf32, #tpu.memory_space<vmem>>, vector<1x128xf32>
      %c0_17 = arith.constant 0 : index
      %c0_18 = arith.constant 0 : index
      %51 = vector.load %arg5[%c0_17, %c0_18] : memref<1x128xf32, #tpu.memory_space<vmem>>, vector<1x128xf32>
      tpu.vector_store %arg5[%c0_17, %c0_18], %50 {strides = array<i32>} : memref<1x128xf32, #tpu.memory_space<vmem>>, vector<1x128xf32>,
    } else {
    }
    return
  }
  func.func @transform_0(%arg0: i32, %arg1: i32) -> (i32, i32) {
    %c1_i32 = arith.constant 1 : i32
    %0 = arith.muli %arg0, %c1_i32 : i32
    %1 = arith.addi %0, %arg1 : i32
    %c0_i32 = arith.constant 0 : i32
    %c0_i32_0 = arith.constant 0 : i32
    return %1, %c0_i32 : i32, i32
  }
  func.func @transform_1(%arg0: i32, %arg1: i32) -> (i32, i32) {
    %c1_i32 = arith.constant 1 : i32
    %0 = arith.muli %arg0, %c1_i32 : i32
    %1 = arith.addi %0, %arg1 : i32
    %c0_i32 = arith.constant 0 : i32
    %c0_i32_0 = arith.constant 0 : i32
    return %1, %c0_i32 : i32, i32
  }
  func.func @transform_2(%arg0: i32, %arg1: i32) -> (i32, i32) {
    %c1_i32 = arith.constant 1 : i32
    %0 = arith.muli %arg0, %c1_i32 : i32
    %1 = arith.addi %0, %arg1 : i32
    %c0_i32 = arith.constant 0 : i32
    %c0_i32_0 = arith.constant 0 : i32
    return %1, %c0_i32 : i32, i32
  }
  func.func @transform_3(%arg0: i32, %arg1: i32) -> (i32, i32) {
    %c0_i32 = arith.constant 0 : i32
    %c0_i32_0 = arith.constant 0 : i32
    return %c0_i32, %arg0 : i32, i32
  }
}

</mosaic_0001>

<bundles_post_ra>
// kernel: _focal_loss_impl.1
= control target key start
LH: loop header
LB: loop body
LE: loop exit
PB: predicated region body
PF: predicated region fallthrough
CT: control target
= control target key end

     0   :  { %v77_v0 = vlaneseq  ;;  %v156_v1 = vmov 0.0   ;;  %s189_s0 = inlined_call_operand.vmem [shape: f32[8,128], index: 0, kind: input, shape index: {}]   ;;  %s190_s1 = inlined_call_operand.vmem [shape: f32[8,128], index: 1, kind: input, shape index: {}]   ;;  %s191_s2 = inlined_call_operand.vmem [shape: f32[8,128], index: 2, kind: input, shape index: {}]   ;;  %s192_s3 = inlined_call_operand.vmem [shape: f32[1,128], index: 3, kind: output, shape index: {}]  }
   0x1   :  { %69 = vst [vmem:[#allocation2] sm:$0x1] %v156_v1  ;;  %v70_v2 = vld [vmem:[%s189_s0] sm:$0xff] }
   0x2   :  { %v71_v3 = vld [vmem:[%s190_s1] sm:$0xff]  ;;  %v73_v4 = vsub.f32 1.0, %v70_v2  ;;  %v78_v6 = vshrl.u32 %v77_v0, 7  ;;  %148 = vlog2.f32 %v70_v2  ;;  %v80_v7 = vand.u32 127, %v77_v0 }
   0x3   :  { %v74_v5 = vsub.f32 1.0, %v71_v3  ;;  %v93_v12 = vmul.f32 %v71_v3, %v71_v3  ;;  %v98_v15 = vmul.f32 %v70_v2, %v70_v2  ;;  %v72_v20 = vld [vmem:[%s191_s2] sm:$0xff] }
   0x4   :  { %v83_v8 = vmul.u32 128, %v78_v6  ;;  %v89_v10 = vmul.f32 %v73_v4, %v73_v4 }
   0x5   :  { %150 = vlog2.f32 %v74_v5  ;;  %v102_v18 = vmul.f32 %v74_v5, %v74_v5 }
   0x6   :  { %152 = vlog2.f32 %v73_v4  ;;  %v84_v9 = vadd.s32 %v83_v8, %v80_v7 }
   0x7   :  { %154 = vlog2.f32 %v71_v3 }
   0x8   :  { %vm85_vm0 = vcmp.lt.s32.totalorder %v84_v9, 8  ;;  %v110_v39 = vld [vmem:[#allocation2] sm:$0x1] }
   0x9   :  { %v146_v21 = vsel %vm85_vm0, 1.0, %v156_v1 }
   0xa   :  { %v88_v27 = vsub.f32 %v146_v21, %v72_v20 }
   0xc   :  { %v149_v11 = vpop.eup %148 }
   0xd   :  { %v91_v14 = vmul.f32 0.6931472, %v149_v11 }
   0xf   :  { %v151_v13 = vpop.eup %150  ;;  %v92_v22 = vmul.f32 %v91_v14, %v89_v10 }
  0x10   :  { %v153_v16 = vpop.eup %152  ;;  %v95_v17 = vmul.f32 0.6931472, %v151_v13 }
  0x11   :  { %v155_v19 = vpop.eup %154  ;;  %v100_v23 = vmul.f32 0.6931472, %v153_v16 }
  0x12   :  { %v96_v24 = vmul.f32 %v95_v17, %v93_v12  ;;  %v104_v25 = vmul.f32 0.6931472, %v155_v19 }
  0x13   :  { %v101_v26 = vmul.f32 %v100_v23, %v98_v15 }
  0x14   :  { %v97_v28 = vadd.f32 %v96_v24, %v92_v22  ;;  %v105_v29 = vmul.f32 %v104_v25, %v102_v18 }
  0x16   :  { %v106_v30 = vadd.f32 %v105_v29, %v101_v26  ;;  %v107_v31 = vmul.f32 %v97_v28, %v72_v20 }
  0x18   :  { %v108_v32 = vmul.f32 %v106_v30, %v88_v27 }
  0x1a   :  { %v109_v33 = vadd.f32 %v108_v32, %v107_v31 }
  0x1c   :  { %v111_v34 = vrot.slane %v109_v33, 4 }
  0x1e   :  { %v112_v35 = vadd.f32 %v111_v34, %v109_v33 }
  0x20   :  { %v113_v36 = vrot.slane %v112_v35, 2 }
  0x22   :  { %v114_v37 = vadd.f32 %v113_v36, %v112_v35 }
  0x24   :  { %v115_v38 = vrot.slane %v114_v37, 1 }
  0x26   :  { %v116_v40 = vadd.f32 %v115_v38, %v114_v37 }
  0x28   :  { %v117_v41 = vsub.f32 %v110_v39, %v116_v40 }
  0x2a   :  { %118 = vst [vmem:[#allocation2] sm:$0x1] %v117_v41 }
  0x31   :  { %v122_v42 = vld [vmem:[#allocation2] sm:$0x1] }
  0x32   :  { %123 = vst [vmem:[%s192_s3] sm:$0x1] %v122_v42 }

</bundles_post_ra>
